<compile_context>
chip_gen: v7x
topology: tpu7x:2x2x1
jax: 0.10.0
libtpu: 0.0.40
codegen_flags: <defaults>
</compile_context>

<pallas_src>
import functools

import jax
import jax.numpy as jnp
from jax.experimental import pallas as pl
from jax.experimental.pallas import tpu as pltpu

COMPUTE_DTYPE = jnp.bfloat16
NEG_SLOPE = 0.2


def _leaky(y):
    return jnp.where(y > 0, y, NEG_SLOPE * y)


def _vmem_cap_bytes():
    try:
        return int(pltpu.get_tpu_info().vmem_capacity_bytes)
    except Exception:
        return 64 * 1024 * 1024  # conservative (v7x per-TensorCore)


def _mosaic_params(semantics, need_bytes, cap):
    limit = int(min(max(2 * int(need_bytes), 32 * 1024 * 1024), int(0.9 * cap)))
    return pltpu.CompilerParams(dimension_semantics=semantics,
                                vmem_limit_bytes=limit)


# --------------------------------------------------------------------------
# In-kernel helpers (traced inside the Pallas kernels)
# --------------------------------------------------------------------------

def _gather_rows(mat, idx2, impl):
    """mat: (N, C); idx2: (M, 1) int32 -> (M, C). Row gather entirely in VMEM."""
    if impl == "take":
        return jnp.take_along_axis(mat, idx2, axis=0, mode="clip")
    # One-hot matmul fallback: always lowers, O(M*N) MXU work (demo scale only).
    m = idx2.shape[0]
    n = mat.shape[0]
    oh = (idx2 == jax.lax.broadcasted_iota(jnp.int32, (m, n), 1)).astype(mat.dtype)
    return jnp.dot(oh, mat, preferred_element_type=jnp.float32).astype(mat.dtype)


def _relpos_encode(xyz_q, xyz_all, idx2, wq, wn, wd, b10, tn, k, impl):
    """relative_pos_encoding + lfa.mlp1 (BN folded) + leaky.  Returns f32 (tn*k, d2).

    concat([dis, rel, tile, nxyz]) @ W  ==  dis*W_d
                                            + query_xyz @ (W_rel + W_tile)   [per query]
                                            + nxyz @ (W_nb - W_rel)
    so the per-query term is computed once and broadcast over K, and no (m,3)
    tile/rel temporaries or rank-10 broadcast chain are materialized.
    """
    nxyz = _gather_rows(xyz_all, idx2, impl).reshape(tn, k, 3)           # (tn,k,3) f32
    rel = xyz_q[:, None, :] - nxyz                                        # (tn,k,3)
    dis = jnp.sqrt(jnp.sum(rel * rel, axis=-1, keepdims=True))            # (tn,k,1)
    q_term = jnp.dot(xyz_q, wq, preferred_element_type=jnp.float32)       # (tn,d2)
    n_term = jnp.dot(nxyz.reshape(tn * k, 3), wn,
                     preferred_element_type=jnp.float32).reshape(tn, k, -1)
    y = n_term + q_term[:, None, :] + dis * wd + b10                      # (tn,k,d2)
    return _leaky(y).reshape(tn * k, -1)


def _softmax_over_k(att, tn, k):
    att = att.reshape(tn, k, att.shape[-1])
    att = att - jnp.max(att, axis=1, keepdims=True)
    e = jnp.exp(att)
    s = jnp.sum(e, axis=1, keepdims=True)
    inv = pl.reciprocal(s, approx=True)        # divide on the (idle) EUP slot
    inv = inv * (2.0 - s * inv)                # one Newton step -> f32 accuracy
    return e * inv


def _att_pool(f_cat, wfc, wm, bm, tn, k):
    """Att_pooling on the explicit concat([f_nb, f_xyz]) (bf16), single full-depth dots."""
    c = f_cat.shape[-1]
    att = jnp.dot(f_cat, wfc, preferred_element_type=jnp.float32)         # (m, c) f32
    att = _softmax_over_k(att, tn, k)                                      # (tn,k,c) f32
    agg = jnp.sum(f_cat.reshape(tn, k, c).astype(jnp.float32) * att, axis=1)   # (tn,c)
    y = jnp.dot(agg.astype(wm.dtype), wm, preferred_element_type=jnp.float32) + bm
    return _leaky(y)                                                       # (tn, c_out) f32


# --------------------------------------------------------------------------
# Pointwise (1x1 conv) kernels
# --------------------------------------------------------------------------

def conv_bn_kernel(x_ref, w_ref, b_ref, o_ref, *, act):
    y = jnp.dot(x_ref[...], w_ref[...], preferred_element_type=jnp.float32) + b_ref[...]
    if act:
        y = _leaky(y)
    o_ref[...] = y.astype(o_ref.dtype)


def conv_bn(x, w, b, act=True, out_dtype=None, tile_m=None):
    M, Cin = x.shape
    Cout = w.shape[1]
    cap = _vmem_cap_bytes()
    if tile_m is None:
        tile_m = 8192 if cap >= (100 << 20) else 4096
    TM = min(tile_m, M)
    out_dtype = out_dtype or x.dtype
    itm_x = jnp.dtype(x.dtype).itemsize
    itm_o = jnp.dtype(out_dtype).itemsize
    need = (2 * TM * (Cin * itm_x + Cout * itm_o)
            + Cin * Cout * jnp.dtype(w.dtype).itemsize + TM * Cout * 4)
    return pl.pallas_call(
        functools.partial(conv_bn_kernel, act=act),
        out_shape=jax.ShapeDtypeStruct((M, Cout), out_dtype),
        grid=(pl.cdiv(M, TM),),
        in_specs=[
            pl.BlockSpec((TM, Cin), lambda i: (i, 0)),
            pl.BlockSpec((Cin, Cout), lambda i: (0, 0)),
            pl.BlockSpec((1, Cout), lambda i: (0, 0)),
        ],
        out_specs=pl.BlockSpec((TM, Cout), lambda i: (i, 0)),
        compiler_params=_mosaic_params(("parallel",), need, cap),
    )(x, w, b)


def residual_kernel(x1_ref, x2_ref, w1_ref, b1_ref, w2_ref, b2_ref, o_ref):
    # mlp2 (no act) + shortcut (no act) + add + leaky_relu(0.2), fused.
    y = (jnp.dot(x1_ref[...], w1_ref[...], preferred_element_type=jnp.float32) + b1_ref[...]
         + jnp.dot(x2_ref[...], w2_ref[...], preferred_element_type=jnp.float32) + b2_ref[...])
    o_ref[...] = _leaky(y).astype(o_ref.dtype)


def residual_out(x1, x2, w1, b1, w2, b2, out_dtype=None, tile_m=None):
    M, C1 = x1.shape
    C2 = x2.shape[1]
    Co = w1.shape[1]
    cap = _vmem_cap_bytes()
    if tile_m is None:
        tile_m = 8192 if cap >= (100 << 20) else 4096
    TM = min(tile_m, M)
    out_dtype = out_dtype or x1.dtype
    itm_x = jnp.dtype(x1.dtype).itemsize
    itm_o = jnp.dtype(out_dtype).itemsize
    need = (2 * TM * ((C1 + C2) * itm_x + Co * itm_o)
            + (C1 + C2) * Co * jnp.dtype(w1.dtype).itemsize + TM * Co * 4)
    return pl.pallas_call(
        residual_kernel,
        out_shape=jax.ShapeDtypeStruct((M, Co), out_dtype),
        grid=(pl.cdiv(M, TM),),
        in_specs=[
            pl.BlockSpec((TM, C1), lambda i: (i, 0)),
            pl.BlockSpec((TM, C2), lambda i: (i, 0)),
            pl.BlockSpec((C1, Co), lambda i: (0, 0)),
            pl.BlockSpec((1, Co), lambda i: (0, 0)),
            pl.BlockSpec((C2, Co), lambda i: (0, 0)),
            pl.BlockSpec((1, Co), lambda i: (0, 0)),
        ],
        out_specs=pl.BlockSpec((TM, Co), lambda i: (i, 0)),
        compiler_params=_mosaic_params(("parallel",), need, cap),
    )(x1, x2, w1, b1, w2, b2)


# --------------------------------------------------------------------------
# Fused LFA stages (gather + rel-pos + attention pooling), per-batch VMEM slabs
# --------------------------------------------------------------------------

def _lfa_stage1_kernel(idx_ref, xyz_hbm, fpc_hbm,
                       wq_ref, wn_ref, wd_ref, b10_ref, wfc_ref, wm_ref, bm_ref,
                       o_ref, xyz_vmem, fpc_vmem, sem, *, impl):
    b = pl.program_id(0)
    i = pl.program_id(1)

    @pl.when(i == 0)
    def _load_slabs():
        # Single-buffered per-batch slabs: one DMA per batch, reused by every N-tile.
        cx = pltpu.make_async_copy(xyz_hbm.at[b], xyz_vmem, sem.at[0])
        cf = pltpu.make_async_copy(fpc_hbm.at[b], fpc_vmem, sem.at[1])
        cx.start()
        cf.start()
        cx.wait()
        cf.wait()

    tn, k = idx_ref.shape
    idx2 = idx_ref[...].reshape(tn * k, 1)
    start = pl.multiple_of(i * tn, tn)
    xyz_q = xyz_vmem[pl.ds(start, tn), :]
    f_xyz = _relpos_encode(xyz_q, xyz_vmem[...], idx2, wq_ref[...], wn_ref[...],
                           wd_ref[...], b10_ref[...], tn, k, impl)          # (m,d2) f32
    f_nb = _gather_rows(fpc_vmem[...], idx2, impl)                          # (m,d2) bf16
    f_cat = jnp.concatenate([f_nb, f_xyz.astype(f_nb.dtype)], axis=-1)      # (m,2*d2)
    y = _att_pool(f_cat, wfc_ref[...], wm_ref[...], bm_ref[...], tn, k)
    o_ref[...] = y.astype(o_ref.dtype)


def _lfa_stage2_kernel(idx_ref, xyz_hbm, fagg_hbm,
                       wq_ref, wn_ref, wd_ref, b10_ref, wl2_ref, bl2_ref,
                       wfc_ref, wm_ref, bm_ref,
                       o_ref, xyz_vmem, fagg_vmem, sem, *, impl):
    b = pl.program_id(0)
    i = pl.program_id(1)

    @pl.when(i == 0)
    def _load_slabs():
        cx = pltpu.make_async_copy(xyz_hbm.at[b], xyz_vmem, sem.at[0])
        cf = pltpu.make_async_copy(fagg_hbm.at[b], fagg_vmem, sem.at[1])
        cx.start()
        cf.start()
        cx.wait()
        cf.wait()

    tn, k = idx_ref.shape
    idx2 = idx_ref[...].reshape(tn * k, 1)
    start = pl.multiple_of(i * tn, tn)
    xyz_q = xyz_vmem[pl.ds(start, tn), :]
    # Recompute f_xyz (cheap) rather than round-tripping (B,N,K,d2) through HBM.
    f_xyz = _relpos_encode(xyz_q, xyz_vmem[...], idx2, wq_ref[...], wn_ref[...],
                           wd_ref[...], b10_ref[...], tn, k, impl)
    f_xyz2 = _leaky(jnp.dot(f_xyz.astype(wl2_ref.dtype), wl2_ref[...],
                            preferred_element_type=jnp.float32) + bl2_ref[...])
    f_nb2 = _gather_rows(fagg_vmem[...], idx2, impl)
    f_cat = jnp.concatenate([f_nb2, f_xyz2.astype(f_nb2.dtype)], axis=-1)
    y = _att_pool(f_cat, wfc_ref[...], wm_ref[...], bm_ref[...], tn, k)
    o_ref[...] = y.astype(o_ref.dtype)


def _choose_tile_n(n, cap, k, d2):
    # f32 temporaries per query row ~ K*(~12*d2) bytes; keep them well under
    # a third of VMEM so the resident slabs + pipeline buffers still fit.
    per_row = k * (12 * max(d2, 8) + 32) * 4
    tn = 1024 if cap >= (100 << 20) else 512
    while tn > 128 and tn * per_row > cap // 3:
        tn //= 2
    return min(tn, n)


def _pad_rows(x, n_pad):
    n = x.shape[1]
    if n == n_pad:
        return x
    pad = [(0, 0)] * x.ndim
    pad[1] = (0, n_pad - n)
    return jnp.pad(x, pad)


def _lfa_call(kernel_fn, neigh_idx, xyz, f_slab, weights, out_channels,
              *, impl, tile_n):
    B, N, K = neigh_idx.shape
    d2 = f_slab.shape[-1]
    cdt = f_slab.dtype
    cap = _vmem_cap_bytes()
    TN = min(tile_n or _choose_tile_n(N, cap, K, d2), N)
    n_tiles = pl.cdiv(N, TN)
    N_pad = n_tiles * TN
    idx_p = _pad_rows(neigh_idx, N_pad)
    xyz_p = _pad_rows(xyz, N_pad)
    f_p = _pad_rows(f_slab, N_pad)

    itm = jnp.dtype(cdt).itemsize
    need = (N_pad * 3 * 4 + N_pad * d2 * itm                 # single-buffered slabs
            + 2 * TN * K * 4 + 2 * TN * out_channels * itm   # pipelined idx / out tiles
            + TN * K * (12 * d2 + 32) * 4)                   # f32 temporaries

    c0 = lambda b, i: (0, 0)
    out = pl.pallas_call(
        functools.partial(kernel_fn, impl=impl),
        out_shape=jax.ShapeDtypeStruct((B, N_pad, out_channels), cdt),
        grid=(B, n_tiles),
        in_specs=[
            pl.BlockSpec((None, TN, K), lambda b, i: (b, i, 0)),   # neigh_idx tile
            pl.BlockSpec(memory_space=pl.ANY),                     # full xyz (HBM)
            pl.BlockSpec(memory_space=pl.ANY),                     # full feature slab (HBM)
        ] + [pl.BlockSpec(w.shape, c0) for w in weights],
        out_specs=pl.BlockSpec((None, TN, out_channels), lambda b, i: (b, i, 0)),
        scratch_shapes=[
            pltpu.VMEM((N_pad, 3), jnp.float32),
            pltpu.VMEM((N_pad, d2), cdt),
            pltpu.SemaphoreType.DMA((2,)),
        ],
        compiler_params=_mosaic_params(("parallel", "arbitrary"), need, cap),
    )(idx_p, xyz_p, f_p, *weights)
    return out[:, :N, :]


def lfa_stage1(neigh_idx, xyz, f_pc, wq, wn, wd, b10, wfc, wm, bm,
               *, impl="take", tile_n=None):
    return _lfa_call(_lfa_stage1_kernel, neigh_idx, xyz, f_pc,
                     (wq, wn, wd, b10, wfc, wm, bm), wm.shape[1],
                     impl=impl, tile_n=tile_n)


def lfa_stage2(neigh_idx, xyz, f_agg, wq, wn, wd, b10, wl2, bl2, wfc, wm, bm,
               *, impl="take", tile_n=None):
    return _lfa_call(_lfa_stage2_kernel, neigh_idx, xyz, f_agg,
                     (wq, wn, wd, b10, wl2, bl2, wfc, wm, bm), wm.shape[1],
                     impl=impl, tile_n=tile_n)


# --------------------------------------------------------------------------
# Full forward
# --------------------------------------------------------------------------

def dilated_res_block(feature, xyz, neigh_idx, p, *, compute_dtype=COMPUTE_DTYPE,
                      gather_impl="take", tile_n=None):
    B, N, d_in = feature.shape
    d2 = p["w_mlp1"].shape[1]
    d_out = 2 * d2
    cdt = compute_dtype

    # --- trace-time prep: eval-mode BN fold, rel-pos weight fold, bf16 cast ---
    fold = lambda w, s: w * s
    w_mlp1 = fold(p["w_mlp1"], p["s_mlp1"]).astype(cdt)
    wl2 = fold(p["w_lfa2"], p["s_lfa2"]).astype(cdt)
    wm1 = fold(p["w_attmlp1"], p["s_attmlp1"]).astype(cdt)
    wm2 = fold(p["w_attmlp2"], p["s_attmlp2"]).astype(cdt)
    w_mlp2 = fold(p["w_mlp2"], p["s_mlp2"]).astype(cdt)
    w_sc = fold(p["w_sc"], p["s_sc"]).astype(cdt)
    wfc1 = p["w_fc1"].astype(cdt)
    wfc2 = p["w_fc2"].astype(cdt)
    # rel-pos mlp (lfa.mlp1): fold BN, then split the 10-row weight into the
    # algebraically reduced (dis / query / neighbour) terms; kept f32 (tiny).
    w10 = fold(p["w_lfa1"], p["s_lfa1"])                      # (10, d2)
    wd = w10[0:1]                                             # dis row
    wq = w10[1:4] + w10[4:7]                                  # W_rel + W_tile
    wn = w10[7:10] - w10[1:4]                                 # W_nb  - W_rel
    b10 = p["b_lfa1"]

    feature_c = feature.astype(cdt)

    # mlp1 (pointwise conv + BN + leaky) -> bf16 f_pc slab
    f_pc = conv_bn(feature_c.reshape(B * N, d_in), w_mlp1, p["b_mlp1"],
                   act=True).reshape(B, N, d2)

    # Building_block (LFA): two fused kernels, no K-expanded HBM intermediates.
    f_agg = lfa_stage1(neigh_idx, xyz, f_pc, wq, wn, wd, b10,
                       wfc1, wm1, p["b_attmlp1"],
                       impl=gather_impl, tile_n=tile_n)                  # (B,N,d2)
    f_agg2 = lfa_stage2(neigh_idx, xyz, f_agg, wq, wn, wd, b10,
                        wl2, p["b_lfa2"], wfc2, wm2, p["b_attmlp2"],
                        impl=gather_impl, tile_n=tile_n)                 # (B,N,d_out)

    # mlp2 + shortcut + add + leaky_relu (fused), f32 output
    out = residual_out(f_agg2.reshape(B * N, d_out), feature_c.reshape(B * N, d_in),
                       w_mlp2, p["b_mlp2"], w_sc, p["b_sc"],
                       out_dtype=feature.dtype)
    return out.reshape(B, N, 2 * d_out)


# --------------------------------------------------------------------------
# Pure-JAX reference (validation) — f32, un-folded params, HIGHEST precision
# --------------------------------------------------------------------------

def gather_neighbour(pc, neigh_idx):
    B, N, C = pc.shape
    K = neigh_idx.shape[-1]
    idx = neigh_idx.reshape(B, N * K)[:, :, None]
    return jnp.take_along_axis(pc, idx, axis=1).reshape(B, N, K, C)


def ref_forward(feature, xyz, neigh_idx, p):
    hi = jax.lax.Precision.HIGHEST

    def conv(x, w, s, b, act):
        y = jnp.matmul(x, w, precision=hi) * s + b
        return _leaky(y) if act else y

    def att(f, wfc, wm, s, b):
        a = jax.nn.softmax(jnp.matmul(f, wfc, precision=hi), axis=2)
        agg = jnp.sum(f * a, axis=2)
        return conv(agg, wm, s, b, True)

    f_pc = conv(feature, p["w_mlp1"], p["s_mlp1"], p["b_mlp1"], True)
    nxyz = gather_neighbour(xyz, neigh_idx)
    tile = jnp.broadcast_to(xyz[:, :, None, :], nxyz.shape)
    rel = tile - nxyz
    dis = jnp.sqrt(jnp.sum(rel ** 2, axis=-1, keepdims=True))
    f10 = jnp.concatenate([dis, rel, tile, nxyz], axis=-1)
    f_xyz = conv(f10, p["w_lfa1"], p["s_lfa1"], p["b_lfa1"], True)
    f_nb = gather_neighbour(f_pc, neigh_idx)
    f_agg = att(jnp.concatenate([f_nb, f_xyz], axis=-1),
                p["w_fc1"], p["w_attmlp1"], p["s_attmlp1"], p["b_attmlp1"])
    f_xyz2 = conv(f_xyz, p["w_lfa2"], p["s_lfa2"], p["b_lfa2"], True)
    f_nb2 = gather_neighbour(f_agg, neigh_idx)
    f_agg2 = att(jnp.concatenate([f_nb2, f_xyz2], axis=-1),
                 p["w_fc2"], p["w_attmlp2"], p["s_attmlp2"], p["b_attmlp2"])
    y = (conv(f_agg2, p["w_mlp2"], p["s_mlp2"], p["b_mlp2"], False)
         + conv(feature, p["w_sc"], p["s_sc"], p["b_sc"], False))
    return _leaky(y)


# --------------------------------------------------------------------------
# Deterministic parameter init
# --------------------------------------------------------------------------

def init_params(key, d_in, d_out):
    d2 = d_out // 2

    def w(k, shape, fan_in):
        return jax.random.normal(k, shape, jnp.float32) / jnp.sqrt(float(fan_in))

    def sb(k, c):
        k1, k2 = jax.random.split(k)
        return (1.0 + 0.1 * jax.random.normal(k1, (1, c), jnp.float32),
                0.1 * jax.random.normal(k2, (1, c), jnp.float32))

    ks = jax.random.split(key, 16)
    p = {}
    p["w_mlp1"] = w(ks[0], (d_in, d2), d_in)
    p["s_mlp1"], p["b_mlp1"] = sb(ks[1], d2)
    p["w_lfa1"] = w(ks[2], (10, d2), 10)
    p["s_lfa1"], p["b_lfa1"] = sb(ks[3], d2)
    p["w_fc1"] = w(ks[4], (d_out, d_out), d_out)
    p["w_attmlp1"] = w(ks[5], (d_out, d2), d_out)
    p["s_attmlp1"], p["b_attmlp1"] = sb(ks[6], d2)
    p["w_lfa2"] = w(ks[7], (d2, d2), d2)
    p["s_lfa2"], p["b_lfa2"] = sb(ks[8], d2)
    p["w_fc2"] = w(ks[9], (d_out, d_out), d_out)
    p["w_attmlp2"] = w(ks[10], (d_out, d_out), d_out)
    p["s_attmlp2"], p["b_attmlp2"] = sb(ks[11], d_out)
    p["w_mlp2"] = w(ks[12], (d_out, 2 * d_out), d_out)
    p["s_mlp2"], p["b_mlp2"] = sb(ks[13], 2 * d_out)
    p["w_sc"] = w(ks[14], (d_in, 2 * d_out), d_in)
    p["s_sc"], p["b_sc"] = sb(ks[15], 2 * d_out)
    return p


if __name__ == "__main__":
    key = jax.random.PRNGKey(0)
    B, N, K = 2, 64, 8
    d_in, d_out = 8, 16
    kf, kx, ki, kp = jax.random.split(key, 4)
    feature = jax.random.normal(kf, (B, N, d_in), jnp.float32)   # torch: (B, d_in, N, 1)
    xyz = jax.random.normal(kx, (B, N, 3), jnp.float32)
    neigh_idx = jax.random.randint(ki, (B, N, K), 0, N, dtype=jnp.int32)
    params = init_params(kp, d_in, d_out)

    def run(impl):
        return jax.block_until_ready(
            dilated_res_block(feature, xyz, neigh_idx, params, gather_impl=impl))

    try:
        out = run("take")           # in-kernel VMEM row gather (preferred)
    except Exception:
        # Demo-only fallback if the dynamic-gather lowering is unavailable.
        out = run("onehot")

    ref = jax.block_until_ready(ref_forward(feature, xyz, neigh_idx, params))

    assert out.shape == (B, N, 2 * d_out), out.shape
    err = float(jnp.max(jnp.abs(out.astype(jnp.float32) - ref)))
    tol = 2e-2 + 2e-2 * float(jnp.max(jnp.abs(ref)))   # bf16 MXU inputs, f32 accumulation
    if err > tol:
        raise AssertionError(f"Pallas result mismatch vs JAX reference: "
                             f"max abs err {err} (tol {tol})")
    print("KERNEL_OK")
</pallas_src>

<mosaic_0001>
module attributes {stable_mosaic.version = 11 : i64} {
  func.func @conv_bn_kernel(%arg0: i32, %arg1: memref<128x8xbf16, #tpu.memory_space<vmem>>, %arg2: memref<8x8xbf16, #tpu.memory_space<vmem>>, %arg3: memref<1x8xf32, #tpu.memory_space<vmem>>, %arg4: memref<128x8xbf16, #tpu.memory_space<vmem>>) attributes {dimension_semantics = [#tpu.dimension_semantics<parallel>], iteration_bounds = array<i64: 1>, scalar_prefetch = 0 : i64, scratch_operands = 0 : i64, tpu.core_type = #tpu.core_type<tc>, window_params = [{transform_indices = @transform_0, window_bounds = array<i64: 128, 8>}, {pipeline_mode = #tpu.pipeline_mode<synchronous>, transform_indices = @transform_1, window_bounds = array<i64: 8, 8>}, {pipeline_mode = #tpu.pipeline_mode<synchronous>, transform_indices = @transform_2, window_bounds = array<i64: 1, 8>}, {transform_indices = @transform_3, window_bounds = array<i64: 128, 8>}]} {
    %c0 = arith.constant 0 : index
    %c0_0 = arith.constant 0 : index
    %0 = vector.load %arg1[%c0, %c0_0] : memref<128x8xbf16, #tpu.memory_space<vmem>>, vector<128x8xbf16>
    %c0_1 = arith.constant 0 : index
    %c0_2 = arith.constant 0 : index
    %1 = vector.load %arg2[%c0_1, %c0_2] : memref<8x8xbf16, #tpu.memory_space<vmem>>, vector<8x8xbf16>
    %cst = arith.constant dense<0.000000e+00> : vector<128x8xf32>
    %2 = tpu.matmul %0, %1, %cst {dimension_numbers = #tpu.dot_dimension_numbers<[1], [0], [0], [1], [0, 0, 1, 1], [], []>} : vector<128x8xbf16>, vector<8x8xbf16>, vector<128x8xf32> -> vector<128x8xf32>
    %c0_3 = arith.constant 0 : index
    %c0_4 = arith.constant 0 : index
    %3 = vector.load %arg3[%c0_3, %c0_4] : memref<1x8xf32, #tpu.memory_space<vmem>>, vector<1x8xf32>
    %4 = vector.broadcast %3 : vector<1x8xf32> to vector<128x8xf32>
    %5 = arith.addf %2, %4 : vector<128x8xf32>
    %cst_5 = arith.constant 0.000000e+00 : f32
    %6 = vector.broadcast %cst_5 : f32 to vector<128x8xf32>
    %7 = arith.cmpf ogt, %5, %6 : vector<128x8xf32>
    %cst_6 = arith.constant 2.000000e-01 : f32
    %8 = vector.broadcast %cst_6 : f32 to vector<128x8xf32>
    %9 = arith.mulf %8, %5 : vector<128x8xf32>
    %10 = arith.select %7, %5, %9 : vector<128x8xi1>, vector<128x8xf32>
    %11 = arith.truncf %10 : vector<128x8xf32> to vector<128x8xbf16>
    %c0_7 = arith.constant 0 : index
    %c0_8 = arith.constant 0 : index
    %12 = vector.load %arg4[%c0_7, %c0_8] : memref<128x8xbf16, #tpu.memory_space<vmem>>, vector<128x8xbf16>
    tpu.vector_store %arg4[%c0_7, %c0_8], %11 {strides = array<i32>} : memref<128x8xbf16, #tpu.memory_space<vmem>>, vector<128x8xbf16>,
    return
  }
  func.func @transform_0(%arg0: i32) -> (i32, i32) {
    %c0_i32 = arith.constant 0 : i32
    %c0_i32_0 = arith.constant 0 : i32
    return %arg0, %c0_i32 : i32, i32
  }
  func.func @transform_1(%arg0: i32) -> (i32, i32) {
    %c0_i32 = arith.constant 0 : i32
    %c0_i32_0 = arith.constant 0 : i32
    %c0_i32_1 = arith.constant 0 : i32
    return %c0_i32, %c0_i32_0 : i32, i32
  }
  func.func @transform_2(%arg0: i32) -> (i32, i32) {
    %c0_i32 = arith.constant 0 : i32
    %c0_i32_0 = arith.constant 0 : i32
    %c0_i32_1 = arith.constant 0 : i32
    return %c0_i32, %c0_i32_0 : i32, i32
  }
  func.func @transform_3(%arg0: i32) -> (i32, i32) {
    %c0_i32 = arith.constant 0 : i32
    %c0_i32_0 = arith.constant 0 : i32
    return %arg0, %c0_i32 : i32, i32
  }
}

module attributes {stable_mosaic.version = 11 : i64} {
  func.func @conv_bn_kernel(%arg0: i32, %arg1: memref<128x8xbf16, #tpu.memory_space<vmem>>, %arg2: memref<8x8xbf16, #tpu.memory_space<vmem>>, %arg3: memref<1x8xf32, #tpu.memory_space<vmem>>, %arg4: memref<128x8xbf16, #tpu.memory_space<vmem>>) attributes {dimension_semantics = [#tpu.dimension_semantics<parallel>], iteration_bounds = array<i64: 1>, scalar_prefetch = 0 : i64, scratch_operands = 0 : i64, tpu.core_type = #tpu.core_type<tc>, window_params = [{transform_indices = @transform_0, window_bounds = array<i64: 128, 8>}, {pipeline_mode = #tpu.pipeline_mode<synchronous>, transform_indices = @transform_1, window_bounds = array<i64: 8, 8>}, {pipeline_mode = #tpu.pipeline_mode<synchronous>, transform_indices = @transform_2, window_bounds = array<i64: 1, 8>}, {transform_indices = @transform_3, window_bounds = array<i64: 128, 8>}]} {
    %c0 = arith.constant 0 : index
    %c0_0 = arith.constant 0 : index
    %0 = vector.load %arg1[%c0, %c0_0] : memref<128x8xbf16, #tpu.memory_space<vmem>>, vector<128x8xbf16>
    %c0_1 = arith.constant 0 : index
    %c0_2 = arith.constant 0 : index
    %1 = vector.load %arg2[%c0_1, %c0_2] : memref<8x8xbf16, #tpu.memory_space<vmem>>, vector<8x8xbf16>
    %cst = arith.constant dense<0.000000e+00> : vector<128x8xf32>
    %2 = tpu.matmul %0, %1, %cst {dimension_numbers = #tpu.dot_dimension_numbers<[1], [0], [0], [1], [0, 0, 1, 1], [], []>} : vector<128x8xbf16>, vector<8x8xbf16>, vector<128x8xf32> -> vector<128x8xf32>
    %c0_3 = arith.constant 0 : index
    %c0_4 = arith.constant 0 : index
    %3 = vector.load %arg3[%c0_3, %c0_4] : memref<1x8xf32, #tpu.memory_space<vmem>>, vector<1x8xf32>
    %4 = vector.broadcast %3 : vector<1x8xf32> to vector<128x8xf32>
    %5 = arith.addf %2, %4 : vector<128x8xf32>
    %cst_5 = arith.constant 0.000000e+00 : f32
    %6 = vector.broadcast %cst_5 : f32 to vector<128x8xf32>
    %7 = arith.cmpf ogt, %5, %6 : vector<128x8xf32>
    %cst_6 = arith.constant 2.000000e-01 : f32
    %8 = vector.broadcast %cst_6 : f32 to vector<128x8xf32>
    %9 = arith.mulf %8, %5 : vector<128x8xf32>
    %10 = arith.select %7, %5, %9 : vector<128x8xi1>, vector<128x8xf32>
    %11 = arith.truncf %10 : vector<128x8xf32> to vector<128x8xbf16>
    %c0_7 = arith.constant 0 : index
    %c0_8 = arith.constant 0 : index
    %12 = vector.load %arg4[%c0_7, %c0_8] : memref<128x8xbf16, #tpu.memory_space<vmem>>, vector<128x8xbf16>
    tpu.vector_store %arg4[%c0_7, %c0_8], %11 {strides = array<i32>} : memref<128x8xbf16, #tpu.memory_space<vmem>>, vector<128x8xbf16>,
    return
  }
  func.func @transform_0(%arg0: i32) -> (i32, i32) {
    %c0_i32 = arith.constant 0 : i32
    %c0_i32_0 = arith.constant 0 : i32
    return %arg0, %c0_i32 : i32, i32
  }
  func.func @transform_1(%arg0: i32) -> (i32, i32) {
    %c0_i32 = arith.constant 0 : i32
    %c0_i32_0 = arith.constant 0 : i32
    %c0_i32_1 = arith.constant 0 : i32
    return %c0_i32, %c0_i32_0 : i32, i32
  }
  func.func @transform_2(%arg0: i32) -> (i32, i32) {
    %c0_i32 = arith.constant 0 : i32
    %c0_i32_0 = arith.constant 0 : i32
    %c0_i32_1 = arith.constant 0 : i32
    return %c0_i32, %c0_i32_0 : i32, i32
  }
  func.func @transform_3(%arg0: i32) -> (i32, i32) {
    %c0_i32 = arith.constant 0 : i32
    %c0_i32_0 = arith.constant 0 : i32
    return %arg0, %c0_i32 : i32, i32
  }
}

</mosaic_0001>

<bundles_post_ra>
// kernel: tpu_custom_call.1
= control target key start
LH: loop header
LB: loop body
LE: loop exit
PB: predicated region body
PF: predicated region fallthrough
CT: control target
= control target key end

     0   :  { %vm104_vm0 = vcmask 1043456   ;;  %vm79_vm1 = vcmask 64512   ;;  %vm317_vm2 = vcmask 60416   ;;  %s566_s1 = inlined_call_operand.vmem [shape: bf16[8,8], index: 1, kind: input, shape index: {}]   ;;  %s567_s0 = inlined_call_operand.vmem [shape: bf16[128,8], index: 0, kind: input, shape index: {}]   ;;  %s568_s2 = inlined_call_operand.vmem [shape: f32[1,8], index: 2, kind: input, shape index: {}]   ;;  %s569_s3 = inlined_call_operand.vmem [shape: bf16[128,8], index: 3, kind: output, shape index: {}]  }
   0x1   :  { %v31_v0 = vld [vmem:[%s566_s1] sm:$0xf]  ;;  %v420_v4 = vld [vmem:[%s567_s0 + $0x8] sm:$0xff]   ;;  %v422_v6 = vld [vmem:[%s567_s0 + $0x10] sm:$0xff]  }
   0x2   :  { %416 = vmatprep.subr.msk.bf16.mxu0 %vm104_vm0, %v31_v0  ;;  %417 = vmatprep.subr.msk.bf16.mxu1 %vm104_vm0, %v31_v0  ;;  %v106_v1 = vsel %vm104_vm0, %v31_v0, 0  ;;  %v418_v2 = vld [vmem:[%s567_s0] sm:$0xff]   ;;  %v421_v5 = vld [vmem:[%s567_s0 + $0x28] sm:$0xff]   ;;  %v423_v7 = vld [vmem:[%s567_s0 + $0x30] sm:$0xff]  }
   0x3   :  { %397 = vmatpush3.bf16.msra.mxu0 %v106_v1  ;;  %415 = vmatpush3.bf16.msra.mxu1 %v106_v1  ;;  %v419_v3 = vld [vmem:[%s567_s0 + $0x20] sm:$0xff]   ;;  %v424_v8 = vld [vmem:[%s567_s0 + $0x18] sm:$0xff]  }
   0x4   :  { %398 = vmatprep.mubr.msk.bf16.mxu0 %vm79_vm1, %v418_v2  ;;  %406 = vmatprep.mubr.msk.bf16.mxu1 %vm79_vm1, %v419_v3  ;;  %v425_v9 = vld [vmem:[%s567_s0 + $0x38] sm:$0xff]   ;;  %v484_v10 = vld [vmem:[%s568_s2] ss:$0 sm:$0xff] }
   0x6   :  { %399 = vmatmul.mubr.msk.bf16.vlgmr.msra.gmra.mrb[0].mxu0 %vm79_vm1, %v420_v4  ;;  %407 = vmatmul.mubr.msk.bf16.vlgmr.msra.gmra.mrb[0].mxu1 %vm79_vm1, %v421_v5 }
   0x7   :  { %402 = vmatprep.mubr.msk.bf16.mxu0 %vm79_vm1, %v422_v6  ;;  %410 = vmatprep.mubr.msk.bf16.mxu1 %vm79_vm1, %v423_v7 }
   0xe   :  { %403 = vmatmul.mubr.msk.bf16.gmra.mrb[4].mxu0 %vm79_vm1, %v424_v8  ;;  %411 = vmatmul.mubr.msk.bf16.gmra.mrb[4].mxu1 %vm79_vm1, %v425_v9 }
  0xd9   :  { %v400_v11 = vpop.f32.mrb[0].mxu0  ;;  %v408_v13 = vpop.f32.mrb[0].mxu1 }
  0xda   :  { %v151_v12 = vadd.f32 %v400_v11, %v484_v10  ;;  %v142_v14 = vpop.f32.mrb[1].mxu0  ;;  %v183_v15 = vadd.f32 %v408_v13, %v484_v10  ;;  %v174_v17 = vpop.f32.mrb[1].mxu1 }
  0xdb   :  { %v143_v16 = vadd.f32 %v484_v10, %v142_v14  ;;  %v401_v18 = vpop.f32.mrb[2].mxu0  ;;  %v175_v20 = vadd.f32 %v484_v10, %v174_v17  ;;  %v409_v22 = vpop.f32.mrb[2].mxu1 }
  0xdc   :  { %vm207_vm3 = vcmp.gt.f32.partialorder %v151_v12, 0.0  ;;  %v223_v19 = vmul.f32 0.2, %v151_v12  ;;  %v154_v21 = vadd.f32 %v401_v18, %v484_v10  ;;  %v145_v23 = vpop.f32.mrb[3].mxu0  ;;  %vm215_vm4 = vcmp.gt.f32.partialorder %v183_v15, 0.0  ;;  %v177_v28 = vpop.f32.mrb[3].mxu1 }
  0xdd   :  { %v231_v24 = vmul.f32 0.2, %v183_v15  ;;  %vm205_vm5 = vcmp.gt.f32.partialorder %v143_v16, 0.0  ;;  %v221_v25 = vmul.f32 0.2, %v143_v16  ;;  %vm213_vm6 = vcmp.gt.f32.partialorder %v175_v20, 0.0 }
  0xde   :  { %v239_v26 = vsel %vm207_vm3, %v151_v12, %v223_v19  ;;  %v229_v27 = vmul.f32 0.2, %v175_v20  ;;  %vm208_vm7 = vcmp.gt.f32.partialorder %v154_v21, 0.0  ;;  %v224_v32 = vmul.f32 0.2, %v154_v21 }
  0xdf   :  { %v373_v29 = vpack.c.bf16 %v239_v26, %v239_v26  ;;  %v247_v30 = vsel %vm215_vm4, %v183_v15, %v231_v24  ;;  %v237_v31 = vsel %vm205_vm5, %v143_v16, %v221_v25  ;;  %v186_v36 = vadd.f32 %v409_v22, %v484_v10 }
  0xe0   :  { %v381_v33 = vpack.c.bf16 %v247_v30, %v247_v30  ;;  %v371_v34 = vpack.c.bf16 %v237_v31, %v237_v31  ;;  %v245_v35 = vsel %vm213_vm6, %v175_v20, %v229_v27  ;;  %v240_v38 = vsel %vm208_vm7, %v154_v21, %v224_v32 }
  0xe1   :  { %320 = vst.msk [vmem:[%s569_s3 + $0x8] sm:$0xf] %vm317_vm2, %v373_v29  ;;  %v379_v37 = vpack.c.bf16 %v245_v35, %v245_v35  ;;  %v146_v39 = vadd.f32 %v484_v10, %v145_v23  ;;  %v178_v40 = vadd.f32 %v484_v10, %v177_v28  ;;  %v404_v41 = vpop.f32.mrb[4].mxu0  ;;  %v374_v42 = vpack.c.bf16 %v240_v38, %v240_v38  ;;  %v412_v45 = vpop.f32.mrb[4].mxu1 }
  0xe2   :  { %328 = vst.msk [vmem:[%s569_s3 + $0x28] sm:$0xf] %vm317_vm2, %v381_v33  ;;  %318 = vst.msk [vmem:[%s569_s3] sm:$0xf] %vm317_vm2, %v371_v34  ;;  %vm216_vm8 = vcmp.gt.f32.partialorder %v186_v36, 0.0  ;;  %v167_v44 = vadd.f32 %v404_v41, %v484_v10  ;;  %v158_v46 = vpop.f32.mrb[5].mxu0  ;;  %v199_v51 = vadd.f32 %v412_v45, %v484_v10 }
  0xe3   :  { %v232_v43 = vmul.f32 0.2, %v186_v36  ;;  %326 = vst.msk [vmem:[%s569_s3 + $0x20] sm:$0xf] %vm317_vm2, %v379_v37  ;;  %vm206_vm9 = vcmp.gt.f32.partialorder %v146_v39, 0.0  ;;  %vm214_vm10 = vcmp.gt.f32.partialorder %v178_v40, 0.0  ;;  %v159_v57 = vadd.f32 %v484_v10, %v158_v46 }
  0xe4   :  { %v222_v47 = vmul.f32 0.2, %v146_v39  ;;  %v230_v48 = vmul.f32 0.2, %v178_v40  ;;  %321 = vst.msk [vmem:[%s569_s3 + $0xc] sm:$0xf] %vm317_vm2, %v374_v42 }
  0xe5   :  { %v248_v49 = vsel %vm216_vm8, %v186_v36, %v232_v43  ;;  %vm211_vm11 = vcmp.gt.f32.partialorder %v167_v44, 0.0  ;;  %v227_v50 = vmul.f32 0.2, %v167_v44  ;;  %v190_v52 = vpop.f32.mrb[5].mxu1  ;;  %v405_v53 = vpop.f32.mrb[6].mxu0  ;;  %vm219_vm12 = vcmp.gt.f32.partialorder %v199_v51, 0.0 }
  0xe6   :  { %v382_v54 = vpack.c.bf16 %v248_v49, %v248_v49  ;;  %v238_v55 = vsel %vm206_vm9, %v146_v39, %v222_v47  ;;  %v246_v56 = vsel %vm214_vm10, %v178_v40, %v230_v48  ;;  %v413_v58 = vpop.f32.mrb[6].mxu1  ;;  %v161_v59 = vpop.f32.mrb[7].mxu0  ;;  %v235_v1 = vmul.f32 0.2, %v199_v51 }
  0xe7   :  { %v372_v60 = vpack.c.bf16 %v238_v55, %v238_v55  ;;  %v380_v61 = vpack.c.bf16 %v246_v56, %v246_v56  ;;  %v243_v62 = vsel %vm211_vm11, %v167_v44, %v227_v50  ;;  %v193_v63 = vpop.f32.mrb[7].mxu1  ;;  %vm209_vm13 = vcmp.gt.f32.partialorder %v159_v57, 0.0 }
  0xe8   :  { %329 = vst.msk [vmem:[%s569_s3 + $0x2c] sm:$0xf] %vm317_vm2, %v382_v54  ;;  %v377_v0 = vpack.c.bf16 %v243_v62, %v243_v62  ;;  %v225_v2 = vmul.f32 0.2, %v159_v57  ;;  %v191_v3 = vadd.f32 %v484_v10, %v190_v52  ;;  %v170_v4 = vadd.f32 %v405_v53, %v484_v10 }
  0xe9   :  { %319 = vst.msk [vmem:[%s569_s3 + $0x4] sm:$0xf] %vm317_vm2, %v372_v60  ;;  %327 = vst.msk [vmem:[%s569_s3 + $0x24] sm:$0xf] %vm317_vm2, %v380_v61  ;;  %v202_v5 = vadd.f32 %v413_v58, %v484_v10  ;;  %v162_v6 = vadd.f32 %v484_v10, %v161_v59  ;;  %v251_v7 = vsel %vm219_vm12, %v199_v51, %v235_v1 }
  0xea   :  { %324 = vst.msk [vmem:[%s569_s3 + $0x18] sm:$0xf] %vm317_vm2, %v377_v0  ;;  %v241_v8 = vsel %vm209_vm13, %v159_v57, %v225_v2  ;;  %v194_v9 = vadd.f32 %v484_v10, %v193_v63  ;;  %v385_v11 = vpack.c.bf16 %v251_v7, %v251_v7  ;;  %vm217_vm14 = vcmp.gt.f32.partialorder %v191_v3, 0.0 }
  0xeb   :  { %v375_v12 = vpack.c.bf16 %v241_v8, %v241_v8  ;;  %v233_v13 = vmul.f32 0.2, %v191_v3  ;;  %vm212_vm15 = vcmp.gt.f32.partialorder %v170_v4, 0.0  ;;  %v228_v14 = vmul.f32 0.2, %v170_v4 }
  0xec   :  { %vm220_vm0 = vcmp.gt.f32.partialorder %v202_v5, 0.0  ;;  %v236_v15 = vmul.f32 0.2, %v202_v5  ;;  %332 = vst.msk [vmem:[%s569_s3 + $0x38] sm:$0xf] %vm317_vm2, %v385_v11  ;;  %vm210_vm1 = vcmp.gt.f32.partialorder %v162_v6, 0.0 }
  0xed   :  { %322 = vst.msk [vmem:[%s569_s3 + $0x10] sm:$0xf] %vm317_vm2, %v375_v12  ;;  %v249_v16 = vsel %vm217_vm14, %v191_v3, %v233_v13  ;;  %v226_v10 = vmul.f32 0.2, %v162_v6  ;;  %vm218_vm3 = vcmp.gt.f32.partialorder %v194_v9, 0.0  ;;  %v244_v18 = vsel %vm212_vm15, %v170_v4, %v228_v14 }
  0xee   :  { %v383_v17 = vpack.c.bf16 %v249_v16, %v249_v16  ;;  %v252_v19 = vsel %vm220_vm0, %v202_v5, %v236_v15  ;;  %v234_v20 = vmul.f32 0.2, %v194_v9  ;;  %v378_v21 = vpack.c.bf16 %v244_v18, %v244_v18 }
  0xef   :  { %v386_v22 = vpack.c.bf16 %v252_v19, %v252_v19  ;;  %v242_v23 = vsel %vm210_vm1, %v162_v6, %v226_v10 }
  0xf0   :  { %330 = vst.msk [vmem:[%s569_s3 + $0x30] sm:$0xf] %vm317_vm2, %v383_v17  ;;  %v376_v24 = vpack.c.bf16 %v242_v23, %v242_v23  ;;  %v250_v25 = vsel %vm218_vm3, %v194_v9, %v234_v20  ;;  %325 = vst.msk [vmem:[%s569_s3 + $0x1c] sm:$0xf] %vm317_vm2, %v378_v21 }
  0xf1   :  { %333 = vst.msk [vmem:[%s569_s3 + $0x3c] sm:$0xf] %vm317_vm2, %v386_v22  ;;  %v384_v26 = vpack.c.bf16 %v250_v25, %v250_v25 }
  0xf2   :  { %323 = vst.msk [vmem:[%s569_s3 + $0x14] sm:$0xf] %vm317_vm2, %v376_v24 }
  0xf3   :  { %331 = vst.msk [vmem:[%s569_s3 + $0x34] sm:$0xf] %vm317_vm2, %v384_v26 }

// kernel: tpu_custom_call.1
= control target key start
LH: loop header
LB: loop body
LE: loop exit
PB: predicated region body
PF: predicated region fallthrough
CT: control target
= control target key end

     0   :  { %vm104_vm0 = vcmask 1043456   ;;  %vm79_vm1 = vcmask 64512   ;;  %vm317_vm2 = vcmask 60416   ;;  %s566_s1 = inlined_call_operand.vmem [shape: bf16[8,8], index: 1, kind: input, shape index: {}]   ;;  %s567_s0 = inlined_call_operand.vmem [shape: bf16[128,8], index: 0, kind: input, shape index: {}]   ;;  %s568_s2 = inlined_call_operand.vmem [shape: f32[1,8], index: 2, kind: input, shape index: {}]   ;;  %s569_s3 = inlined_call_operand.vmem [shape: bf16[128,8], index: 3, kind: output, shape index: {}]  }
   0x1   :  { %v31_v0 = vld [vmem:[%s566_s1] sm:$0xf]  ;;  %v420_v4 = vld [vmem:[%s567_s0 + $0x8] sm:$0xff]   ;;  %v422_v6 = vld [vmem:[%s567_s0 + $0x10] sm:$0xff]  }
   0x2   :  { %416 = vmatprep.subr.msk.bf16.mxu0 %vm104_vm0, %v31_v0  ;;  %417 = vmatprep.subr.msk.bf16.mxu1 %vm104_vm0, %v31_v0  ;;  %v106_v1 = vsel %vm104_vm0, %v31_v0, 0  ;;  %v418_v2 = vld [vmem:[%s567_s0] sm:$0xff]   ;;  %v421_v5 = vld [vmem:[%s567_s0 + $0x28] sm:$0xff]   ;;  %v423_v7 = vld [vmem:[%s567_s0 + $0x30] sm:$0xff]  }
   0x3   :  { %397 = vmatpush3.bf16.msra.mxu0 %v106_v1  ;;  %415 = vmatpush3.bf16.msra.mxu1 %v106_v1  ;;  %v419_v3 = vld [vmem:[%s567_s0 + $0x20] sm:$0xff]   ;;  %v424_v8 = vld [vmem:[%s567_s0 + $0x18] sm:$0xff]  }
   0x4   :  { %398 = vmatprep.mubr.msk.bf16.mxu0 %vm79_vm1, %v418_v2  ;;  %406 = vmatprep.mubr.msk.bf16.mxu1 %vm79_vm1, %v419_v3  ;;  %v425_v9 = vld [vmem:[%s567_s0 + $0x38] sm:$0xff]   ;;  %v484_v10 = vld [vmem:[%s568_s2] ss:$0 sm:$0xff] }
   0x6   :  { %399 = vmatmul.mubr.msk.bf16.vlgmr.msra.gmra.mrb[0].mxu0 %vm79_vm1, %v420_v4  ;;  %407 = vmatmul.mubr.msk.bf16.vlgmr.msra.gmra.mrb[0].mxu1 %vm79_vm1, %v421_v5 }
   0x7   :  { %402 = vmatprep.mubr.msk.bf16.mxu0 %vm79_vm1, %v422_v6  ;;  %410 = vmatprep.mubr.msk.bf16.mxu1 %vm79_vm1, %v423_v7 }
   0xe   :  { %403 = vmatmul.mubr.msk.bf16.gmra.mrb[4].mxu0 %vm79_vm1, %v424_v8  ;;  %411 = vmatmul.mubr.msk.bf16.gmra.mrb[4].mxu1 %vm79_vm1, %v425_v9 }
  0xd9   :  { %v400_v11 = vpop.f32.mrb[0].mxu0  ;;  %v408_v13 = vpop.f32.mrb[0].mxu1 }
  0xda   :  { %v151_v12 = vadd.f32 %v400_v11, %v484_v10  ;;  %v142_v14 = vpop.f32.mrb[1].mxu0  ;;  %v183_v15 = vadd.f32 %v408_v13, %v484_v10  ;;  %v174_v17 = vpop.f32.mrb[1].mxu1 }
  0xdb   :  { %v143_v16 = vadd.f32 %v484_v10, %v142_v14  ;;  %v401_v18 = vpop.f32.mrb[2].mxu0  ;;  %v175_v20 = vadd.f32 %v484_v10, %v174_v17  ;;  %v409_v22 = vpop.f32.mrb[2].mxu1 }
  0xdc   :  { %vm207_vm3 = vcmp.gt.f32.partialorder %v151_v12, 0.0  ;;  %v223_v19 = vmul.f32 0.2, %v151_v12  ;;  %v154_v21 = vadd.f32 %v401_v18, %v484_v10  ;;  %v145_v23 = vpop.f32.mrb[3].mxu0  ;;  %vm215_vm4 = vcmp.gt.f32.partialorder %v183_v15, 0.0  ;;  %v177_v28 = vpop.f32.mrb[3].mxu1 }
  0xdd   :  { %v231_v24 = vmul.f32 0.2, %v183_v15  ;;  %vm205_vm5 = vcmp.gt.f32.partialorder %v143_v16, 0.0  ;;  %v221_v25 = vmul.f32 0.2, %v143_v16  ;;  %vm213_vm6 = vcmp.gt.f32.partialorder %v175_v20, 0.0 }
  0xde   :  { %v239_v26 = vsel %vm207_vm3, %v151_v12, %v223_v19  ;;  %v229_v27 = vmul.f32 0.2, %v175_v20  ;;  %vm208_vm7 = vcmp.gt.f32.partialorder %v154_v21, 0.0  ;;  %v224_v32 = vmul.f32 0.2, %v154_v21 }
  0xdf   :  { %v373_v29 = vpack.c.bf16 %v239_v26, %v239_v26  ;;  %v247_v30 = vsel %vm215_vm4, %v183_v15, %v231_v24  ;;  %v237_v31 = vsel %vm205_vm5, %v143_v16, %v221_v25  ;;  %v186_v36 = vadd.f32 %v409_v22, %v484_v10 }
  0xe0   :  { %v381_v33 = vpack.c.bf16 %v247_v30, %v247_v30  ;;  %v371_v34 = vpack.c.bf16 %v237_v31, %v237_v31  ;;  %v245_v35 = vsel %vm213_vm6, %v175_v20, %v229_v27  ;;  %v240_v38 = vsel %vm208_vm7, %v154_v21, %v224_v32 }
  0xe1   :  { %320 = vst.msk [vmem:[%s569_s3 + $0x8] sm:$0xf] %vm317_vm2, %v373_v29  ;;  %v379_v37 = vpack.c.bf16 %v245_v35, %v245_v35  ;;  %v146_v39 = vadd.f32 %v484_v10, %v145_v23  ;;  %v178_v40 = vadd.f32 %v484_v10, %v177_v28  ;;  %v404_v41 = vpop.f32.mrb[4].mxu0  ;;  %v374_v42 = vpack.c.bf16 %v240_v38, %v240_v38  ;;  %v412_v45 = vpop.f32.mrb[4].mxu1 }
  0xe2   :  { %328 = vst.msk [vmem:[%s569_s3 + $0x28] sm:$0xf] %vm317_vm2, %v381_v33  ;;  %318 = vst.msk [vmem:[%s569_s3] sm:$0xf] %vm317_vm2, %v371_v34  ;;  %vm216_vm8 = vcmp.gt.f32.partialorder %v186_v36, 0.0  ;;  %v167_v44 = vadd.f32 %v404_v41, %v484_v10  ;;  %v158_v46 = vpop.f32.mrb[5].mxu0  ;;  %v199_v51 = vadd.f32 %v412_v45, %v484_v10 }
  0xe3   :  { %v232_v43 = vmul.f32 0.2, %v186_v36  ;;  %326 = vst.msk [vmem:[%s569_s3 + $0x20] sm:$0xf] %vm317_vm2, %v379_v37  ;;  %vm206_vm9 = vcmp.gt.f32.partialorder %v146_v39, 0.0  ;;  %vm214_vm10 = vcmp.gt.f32.partialorder %v178_v40, 0.0  ;;  %v159_v57 = vadd.f32 %v484_v10, %v158_v46 }
  0xe4   :  { %v222_v47 = vmul.f32 0.2, %v146_v39  ;;  %v230_v48 = vmul.f32 0.2, %v178_v40  ;;  %321 = vst.msk [vmem:[%s569_s3 + $0xc] sm:$0xf] %vm317_vm2, %v374_v42 }
  0xe5   :  { %v248_v49 = vsel %vm216_vm8, %v186_v36, %v232_v43  ;;  %vm211_vm11 = vcmp.gt.f32.partialorder %v167_v44, 0.0  ;;  %v227_v50 = vmul.f32 0.2, %v167_v44  ;;  %v190_v52 = vpop.f32.mrb[5].mxu1  ;;  %v405_v53 = vpop.f32.mrb[6].mxu0  ;;  %vm219_vm12 = vcmp.gt.f32.partialorder %v199_v51, 0.0 }
  0xe6   :  { %v382_v54 = vpack.c.bf16 %v248_v49, %v248_v49  ;;  %v238_v55 = vsel %vm206_vm9, %v146_v39, %v222_v47  ;;  %v246_v56 = vsel %vm214_vm10, %v178_v40, %v230_v48  ;;  %v413_v58 = vpop.f32.mrb[6].mxu1  ;;  %v161_v59 = vpop.f32.mrb[7].mxu0  ;;  %v235_v1 = vmul.f32 0.2, %v199_v51 }
  0xe7   :  { %v372_v60 = vpack.c.bf16 %v238_v55, %v238_v55  ;;  %v380_v61 = vpack.c.bf16 %v246_v56, %v246_v56  ;;  %v243_v62 = vsel %vm211_vm11, %v167_v44, %v227_v50  ;;  %v193_v63 = vpop.f32.mrb[7].mxu1  ;;  %vm209_vm13 = vcmp.gt.f32.partialorder %v159_v57, 0.0 }
  0xe8   :  { %329 = vst.msk [vmem:[%s569_s3 + $0x2c] sm:$0xf] %vm317_vm2, %v382_v54  ;;  %v377_v0 = vpack.c.bf16 %v243_v62, %v243_v62  ;;  %v225_v2 = vmul.f32 0.2, %v159_v57  ;;  %v191_v3 = vadd.f32 %v484_v10, %v190_v52  ;;  %v170_v4 = vadd.f32 %v405_v53, %v484_v10 }
  0xe9   :  { %319 = vst.msk [vmem:[%s569_s3 + $0x4] sm:$0xf] %vm317_vm2, %v372_v60  ;;  %327 = vst.msk [vmem:[%s569_s3 + $0x24] sm:$0xf] %vm317_vm2, %v380_v61  ;;  %v202_v5 = vadd.f32 %v413_v58, %v484_v10  ;;  %v162_v6 = vadd.f32 %v484_v10, %v161_v59  ;;  %v251_v7 = vsel %vm219_vm12, %v199_v51, %v235_v1 }
  0xea   :  { %324 = vst.msk [vmem:[%s569_s3 + $0x18] sm:$0xf] %vm317_vm2, %v377_v0  ;;  %v241_v8 = vsel %vm209_vm13, %v159_v57, %v225_v2  ;;  %v194_v9 = vadd.f32 %v484_v10, %v193_v63  ;;  %v385_v11 = vpack.c.bf16 %v251_v7, %v251_v7  ;;  %vm217_vm14 = vcmp.gt.f32.partialorder %v191_v3, 0.0 }
  0xeb   :  { %v375_v12 = vpack.c.bf16 %v241_v8, %v241_v8  ;;  %v233_v13 = vmul.f32 0.2, %v191_v3  ;;  %vm212_vm15 = vcmp.gt.f32.partialorder %v170_v4, 0.0  ;;  %v228_v14 = vmul.f32 0.2, %v170_v4 }
  0xec   :  { %vm220_vm0 = vcmp.gt.f32.partialorder %v202_v5, 0.0  ;;  %v236_v15 = vmul.f32 0.2, %v202_v5  ;;  %332 = vst.msk [vmem:[%s569_s3 + $0x38] sm:$0xf] %vm317_vm2, %v385_v11  ;;  %vm210_vm1 = vcmp.gt.f32.partialorder %v162_v6, 0.0 }
  0xed   :  { %322 = vst.msk [vmem:[%s569_s3 + $0x10] sm:$0xf] %vm317_vm2, %v375_v12  ;;  %v249_v16 = vsel %vm217_vm14, %v191_v3, %v233_v13  ;;  %v226_v10 = vmul.f32 0.2, %v162_v6  ;;  %vm218_vm3 = vcmp.gt.f32.partialorder %v194_v9, 0.0  ;;  %v244_v18 = vsel %vm212_vm15, %v170_v4, %v228_v14 }
  0xee   :  { %v383_v17 = vpack.c.bf16 %v249_v16, %v249_v16  ;;  %v252_v19 = vsel %vm220_vm0, %v202_v5, %v236_v15  ;;  %v234_v20 = vmul.f32 0.2, %v194_v9  ;;  %v378_v21 = vpack.c.bf16 %v244_v18, %v244_v18 }
  0xef   :  { %v386_v22 = vpack.c.bf16 %v252_v19, %v252_v19  ;;  %v242_v23 = vsel %vm210_vm1, %v162_v6, %v226_v10 }
  0xf0   :  { %330 = vst.msk [vmem:[%s569_s3 + $0x30] sm:$0xf] %vm317_vm2, %v383_v17  ;;  %v376_v24 = vpack.c.bf16 %v242_v23, %v242_v23  ;;  %v250_v25 = vsel %vm218_vm3, %v194_v9, %v234_v20  ;;  %325 = vst.msk [vmem:[%s569_s3 + $0x1c] sm:$0xf] %vm317_vm2, %v378_v21 }
  0xf1   :  { %333 = vst.msk [vmem:[%s569_s3 + $0x3c] sm:$0xf] %vm317_vm2, %v386_v22  ;;  %v384_v26 = vpack.c.bf16 %v250_v25, %v250_v25 }
  0xf2   :  { %323 = vst.msk [vmem:[%s569_s3 + $0x14] sm:$0xf] %vm317_vm2, %v376_v24 }
  0xf3   :  { %331 = vst.msk [vmem:[%s569_s3 + $0x34] sm:$0xf] %vm317_vm2, %v384_v26 }

</bundles_post_ra>
